<compile_context>
chip_gen: v7x
topology: tpu7x:2x2x1
jax: 0.10.0
libtpu: 0.0.40
codegen_flags: <defaults>
</compile_context>

<pallas_src>
import jax
import jax.numpy as jnp
from jax.experimental import pallas as pl
from jax.experimental.pallas import tpu as pltpu


def sa_kernel(x_ref, sel_ref, selt_ref, ppool_ref, pscale_ref,
              w1_ref, w2_ref, o_ref):
    # x_ref: (bt*c, h*w) lane-dense block; all helper/weight refs are tiny and
    # constant across grid steps (Pallas skips re-DMA for unchanged blocks).
    x = x_ref[...].astype(jnp.float32)

    # ---- single c-reduced pass: S[b, :] = sum_c x[b*c + ci, :]        (bt, hw)
    s_c = jnp.dot(sel_ref[...], x, preferred_element_type=jnp.float32)

    # ---- both strip descriptors in one matmul: [mean_w | mean_h]    (bt, w+h)
    #      (1/(c*h) and 1/(c*w) are folded into P_pool in the wrapper)
    pooled = jnp.dot(s_c, ppool_ref[...], preferred_element_type=jnp.float32)

    # ---- fused block-diagonal MLP: Linear -> ReLU -> Linear -> Sigmoid
    hid = jnp.maximum(
        jnp.dot(pooled, w1_ref[...], preferred_element_type=jnp.float32), 0.0)
    sig = jax.nn.sigmoid(
        jnp.dot(hid, w2_ref[...], preferred_element_type=jnp.float32))  # (bt, w+h)

    # ---- scale_flat[b, hi*w + wi] = s1[b, wi] + s2[b, hi]  (single matmul)
    scale = jnp.dot(sig, pscale_ref[...], preferred_element_type=jnp.float32)  # (bt, hw)

    # ---- broadcast each batch's scale row to its c channel rows, apply gating
    scale_rows = jnp.dot(selt_ref[...], scale,
                         preferred_element_type=jnp.float32)            # (bt*c, hw)
    o_ref[...] = (x * scale_rows).astype(o_ref.dtype)


def _pick_batch_tile(b, c, h, w, itemsize, budget_bytes=2 << 20):
    """Largest batch tile that divides b, fits the VMEM budget, and keeps the
    block's second-to-last dim (bt*c) legal (multiple of 8 or full extent)."""
    per_batch = c * h * w * itemsize
    cap = max(1, budget_bytes // per_batch)
    for bt in range(min(b, cap), 0, -1):
        if b % bt == 0 and ((bt * c) % 8 == 0 or bt == b):
            return bt
    return b  # full-array block is always a legal BlockSpec


def sa_layer(x, w1_w, w2_w, w1_h, w2_h):
    """x: (b, c, h, w). Weights in PyTorch Linear layout (out, in), bias-free."""
    b, c, h, w = x.shape
    hw = h * w
    f32 = jnp.float32

    bt = _pick_batch_tile(b, c, h, w, x.dtype.itemsize)
    nb = b // bt
    rows = bt * c

    # Lane-dense view: (b*c, h*w) — metadata-only reshape (row-major contiguous).
    x2 = x.reshape(b * c, hw)

    # ---- precomputed tiny helper matrices (wrapper glue, computed once/call) --
    bidx = jnp.arange(bt, dtype=jnp.int32)
    ridx = jnp.arange(rows, dtype=jnp.int32)
    sel = (bidx[:, None] == (ridx[None, :] // c)).astype(f32)            # (bt, bt*c)
    sel_t = sel.T                                                        # (bt*c, bt)

    kidx = jnp.arange(hw, dtype=jnp.int32)
    widx = jnp.arange(w, dtype=jnp.int32)
    hidx = jnp.arange(h, dtype=jnp.int32)
    p1 = ((kidx[:, None] % w) == widx[None, :]).astype(f32) / (c * h)    # (hw, w)
    p2 = ((kidx[:, None] // w) == hidx[None, :]).astype(f32) / (c * w)   # (hw, h)
    p_pool = jnp.concatenate([p1, p2], axis=1)                           # (hw, w+h)

    p1t = ((kidx[None, :] % w) == widx[:, None]).astype(f32)             # (w, hw)
    p2t = ((kidx[None, :] // w) == hidx[:, None]).astype(f32)            # (h, hw)
    p_scale = jnp.concatenate([p1t, p2t], axis=0)                        # (w+h, hw)

    # Block-diagonal MLP weights, pre-transposed to (in, out) layout.
    wh, hh = w // 2, h // 2
    w1_blk = jnp.block([[w1_w.T,                    jnp.zeros((w, hh), f32)],
                        [jnp.zeros((h, wh), f32),   w1_h.T]])            # (w+h, wh+hh)
    w2_blk = jnp.block([[w2_w.T,                    jnp.zeros((wh, h), f32)],
                        [jnp.zeros((hh, w), f32),   w2_h.T]])            # (wh+hh, w+h)

    def const2d(a):
        return pl.BlockSpec(a.shape, lambda i: (0, 0))

    out2 = pl.pallas_call(
        sa_kernel,
        out_shape=jax.ShapeDtypeStruct((b * c, hw), x.dtype),
        grid_spec=pltpu.PrefetchScalarGridSpec(
            num_scalar_prefetch=0,
            grid=(nb,),
            in_specs=[
                pl.BlockSpec((rows, hw), lambda i: (i, 0)),
                const2d(sel), const2d(sel_t),
                const2d(p_pool), const2d(p_scale),
                const2d(w1_blk), const2d(w2_blk),
            ],
            out_specs=pl.BlockSpec((rows, hw), lambda i: (i, 0)),
        ),
        compiler_params=pltpu.CompilerParams(
            dimension_semantics=("parallel",),
            vmem_limit_bytes=32 * 1024 * 1024,
        ),
    )(x2, sel, sel_t, p_pool, p_scale, w1_blk, w2_blk)

    return out2.reshape(b, c, h, w)


def sa_layer_ref(x, w1_w, w2_w, w1_h, w2_h):
    """Pure-JAX reference mirroring the PyTorch forward."""
    pool1 = jnp.mean(x, axis=(1, 2))                              # (b, w)
    pool2 = jnp.mean(x, axis=(1, 3))                              # (b, h)
    s1 = jax.nn.sigmoid(jnp.maximum(pool1 @ w1_w.T, 0.0) @ w2_w.T)
    s2 = jax.nn.sigmoid(jnp.maximum(pool2 @ w1_h.T, 0.0) @ w2_h.T)
    return x * s1[:, None, None, :] + x * s2[:, None, :, None]


if __name__ == "__main__":
    b, c, h, w = 2, 4, 16, 16
    key = jax.random.PRNGKey(0)
    kx, k1, k2, k3, k4 = jax.random.split(key, 5)

    x = jax.random.normal(kx, (b, c, h, w), jnp.float32)
    # PyTorch nn.Linear weight shapes: (out_features, in_features), bias=False
    w1_w = jax.random.normal(k1, (w // 2, w), jnp.float32) * 0.1
    w2_w = jax.random.normal(k2, (w, w // 2), jnp.float32) * 0.1
    w1_h = jax.random.normal(k3, (h // 2, h), jnp.float32) * 0.1
    w2_h = jax.random.normal(k4, (h, h // 2), jnp.float32) * 0.1

    sa = jax.jit(sa_layer)
    out = jax.block_until_ready(sa(x, w1_w, w2_w, w1_h, w2_h))
    ref = sa_layer_ref(x, w1_w, w2_w, w1_h, w2_h)
    assert out.shape == (b, c, h, w) and out.dtype == jnp.float32
    assert jnp.allclose(out, ref, atol=1e-5, rtol=1e-5)
    print("KERNEL_OK")
</pallas_src>

<mosaic_0001>
module attributes {stable_mosaic.version = 11 : i64} {
  func.func @sa_kernel(%arg0: i32, %arg1: memref<8x256xf32, #tpu.memory_space<vmem>>, %arg2: memref<2x8xf32, #tpu.memory_space<vmem>>, %arg3: memref<8x2xf32, #tpu.memory_space<vmem>>, %arg4: memref<256x32xf32, #tpu.memory_space<vmem>>, %arg5: memref<32x256xf32, #tpu.memory_space<vmem>>, %arg6: memref<32x16xf32, #tpu.memory_space<vmem>>, %arg7: memref<16x32xf32, #tpu.memory_space<vmem>>, %arg8: memref<8x256xf32, #tpu.memory_space<vmem>>) attributes {dimension_semantics = [#tpu.dimension_semantics<parallel>], iteration_bounds = array<i64: 1>, scalar_prefetch = 0 : i64, scratch_operands = 0 : i64, tpu.core_type = #tpu.core_type<tc>, window_params = [{transform_indices = @transform_0, window_bounds = array<i64: 8, 256>}, {pipeline_mode = #tpu.pipeline_mode<synchronous>, transform_indices = @transform_1, window_bounds = array<i64: 2, 8>}, {pipeline_mode = #tpu.pipeline_mode<synchronous>, transform_indices = @transform_2, window_bounds = array<i64: 8, 2>}, {pipeline_mode = #tpu.pipeline_mode<synchronous>, transform_indices = @transform_3, window_bounds = array<i64: 256, 32>}, {pipeline_mode = #tpu.pipeline_mode<synchronous>, transform_indices = @transform_4, window_bounds = array<i64: 32, 256>}, {pipeline_mode = #tpu.pipeline_mode<synchronous>, transform_indices = @transform_5, window_bounds = array<i64: 32, 16>}, {pipeline_mode = #tpu.pipeline_mode<synchronous>, transform_indices = @transform_6, window_bounds = array<i64: 16, 32>}, {transform_indices = @transform_7, window_bounds = array<i64: 8, 256>}]} {
    %c0 = arith.constant 0 : index
    %c0_0 = arith.constant 0 : index
    %0 = vector.load %arg1[%c0, %c0_0] : memref<8x256xf32, #tpu.memory_space<vmem>>, vector<8x256xf32>
    %c0_1 = arith.constant 0 : index
    %c0_2 = arith.constant 0 : index
    %1 = vector.load %arg2[%c0_1, %c0_2] : memref<2x8xf32, #tpu.memory_space<vmem>>, vector<2x8xf32>
    %cst = arith.constant dense<0.000000e+00> : vector<2x256xf32>
    %2 = tpu.matmul %1, %0, %cst {dimension_numbers = #tpu.dot_dimension_numbers<[1], [0], [0], [1], [0, 0, 1, 1], [], []>} : vector<2x8xf32>, vector<8x256xf32>, vector<2x256xf32> -> vector<2x256xf32>
    %c0_3 = arith.constant 0 : index
    %c0_4 = arith.constant 0 : index
    %3 = vector.load %arg4[%c0_3, %c0_4] : memref<256x32xf32, #tpu.memory_space<vmem>>, vector<256x32xf32>
    %cst_5 = arith.constant dense<0.000000e+00> : vector<2x32xf32>
    %4 = tpu.matmul %2, %3, %cst_5 {dimension_numbers = #tpu.dot_dimension_numbers<[1], [0], [0], [1], [0, 0, 1, 1], [], []>} : vector<2x256xf32>, vector<256x32xf32>, vector<2x32xf32> -> vector<2x32xf32>
    %c0_6 = arith.constant 0 : index
    %c0_7 = arith.constant 0 : index
    %5 = vector.load %arg6[%c0_6, %c0_7] : memref<32x16xf32, #tpu.memory_space<vmem>>, vector<32x16xf32>
    %cst_8 = arith.constant dense<0.000000e+00> : vector<2x16xf32>
    %6 = tpu.matmul %4, %5, %cst_8 {dimension_numbers = #tpu.dot_dimension_numbers<[1], [0], [0], [1], [0, 0, 1, 1], [], []>} : vector<2x32xf32>, vector<32x16xf32>, vector<2x16xf32> -> vector<2x16xf32>
    %cst_9 = arith.constant 0.000000e+00 : f32
    %7 = vector.broadcast %cst_9 : f32 to vector<2x16xf32>
    %8 = arith.maximumf %6, %7 : vector<2x16xf32>
    %c0_10 = arith.constant 0 : index
    %c0_11 = arith.constant 0 : index
    %9 = vector.load %arg7[%c0_10, %c0_11] : memref<16x32xf32, #tpu.memory_space<vmem>>, vector<16x32xf32>
    %cst_12 = arith.constant dense<0.000000e+00> : vector<2x32xf32>
    %10 = tpu.matmul %8, %9, %cst_12 {dimension_numbers = #tpu.dot_dimension_numbers<[1], [0], [0], [1], [0, 0, 1, 1], [], []>} : vector<2x16xf32>, vector<16x32xf32>, vector<2x32xf32> -> vector<2x32xf32>
    %11 = arith.negf %10 : vector<2x32xf32>
    %12 = math.exp %11 : vector<2x32xf32>
    %cst_13 = arith.constant 1.000000e+00 : f32
    %13 = vector.broadcast %cst_13 : f32 to vector<2x32xf32>
    %14 = arith.addf %13, %12 : vector<2x32xf32>
    %15 = arith.divf %13, %14 : vector<2x32xf32>
    %c0_14 = arith.constant 0 : index
    %c0_15 = arith.constant 0 : index
    %16 = vector.load %arg5[%c0_14, %c0_15] : memref<32x256xf32, #tpu.memory_space<vmem>>, vector<32x256xf32>
    %cst_16 = arith.constant dense<0.000000e+00> : vector<2x256xf32>
    %17 = tpu.matmul %15, %16, %cst_16 {dimension_numbers = #tpu.dot_dimension_numbers<[1], [0], [0], [1], [0, 0, 1, 1], [], []>} : vector<2x32xf32>, vector<32x256xf32>, vector<2x256xf32> -> vector<2x256xf32>
    %c0_17 = arith.constant 0 : index
    %c0_18 = arith.constant 0 : index
    %18 = vector.load %arg3[%c0_17, %c0_18] : memref<8x2xf32, #tpu.memory_space<vmem>>, vector<8x2xf32>
    %cst_19 = arith.constant dense<0.000000e+00> : vector<8x256xf32>
    %19 = tpu.matmul %18, %17, %cst_19 {dimension_numbers = #tpu.dot_dimension_numbers<[1], [0], [0], [1], [0, 0, 1, 1], [], []>} : vector<8x2xf32>, vector<2x256xf32>, vector<8x256xf32> -> vector<8x256xf32>
    %20 = arith.mulf %0, %19 : vector<8x256xf32>
    %c0_20 = arith.constant 0 : index
    %c0_21 = arith.constant 0 : index
    %21 = vector.load %arg8[%c0_20, %c0_21] : memref<8x256xf32, #tpu.memory_space<vmem>>, vector<8x256xf32>
    tpu.vector_store %arg8[%c0_20, %c0_21], %20 {strides = array<i32>} : memref<8x256xf32, #tpu.memory_space<vmem>>, vector<8x256xf32>,
    return
  }
  func.func @transform_0(%arg0: i32) -> (i32, i32) {
    %c0_i32 = arith.constant 0 : i32
    %c0_i32_0 = arith.constant 0 : i32
    return %arg0, %c0_i32 : i32, i32
  }
  func.func @transform_1(%arg0: i32) -> (i32, i32) {
    %c0_i32 = arith.constant 0 : i32
    %c0_i32_0 = arith.constant 0 : i32
    %c0_i32_1 = arith.constant 0 : i32
    return %c0_i32, %c0_i32_0 : i32, i32
  }
  func.func @transform_2(%arg0: i32) -> (i32, i32) {
    %c0_i32 = arith.constant 0 : i32
    %c0_i32_0 = arith.constant 0 : i32
    %c0_i32_1 = arith.constant 0 : i32
    return %c0_i32, %c0_i32_0 : i32, i32
  }
  func.func @transform_3(%arg0: i32) -> (i32, i32) {
    %c0_i32 = arith.constant 0 : i32
    %c0_i32_0 = arith.constant 0 : i32
    %c0_i32_1 = arith.constant 0 : i32
    return %c0_i32, %c0_i32_0 : i32, i32
  }
  func.func @transform_4(%arg0: i32) -> (i32, i32) {
    %c0_i32 = arith.constant 0 : i32
    %c0_i32_0 = arith.constant 0 : i32
    %c0_i32_1 = arith.constant 0 : i32
    return %c0_i32, %c0_i32_0 : i32, i32
  }
  func.func @transform_5(%arg0: i32) -> (i32, i32) {
    %c0_i32 = arith.constant 0 : i32
    %c0_i32_0 = arith.constant 0 : i32
    %c0_i32_1 = arith.constant 0 : i32
    return %c0_i32, %c0_i32_0 : i32, i32
  }
  func.func @transform_6(%arg0: i32) -> (i32, i32) {
    %c0_i32 = arith.constant 0 : i32
    %c0_i32_0 = arith.constant 0 : i32
    %c0_i32_1 = arith.constant 0 : i32
    return %c0_i32, %c0_i32_0 : i32, i32
  }
  func.func @transform_7(%arg0: i32) -> (i32, i32) {
    %c0_i32 = arith.constant 0 : i32
    %c0_i32_0 = arith.constant 0 : i32
    return %arg0, %c0_i32 : i32, i32
  }
}

</mosaic_0001>

<bundles_post_ra>
// kernel: sa_layer.1
= control target key start
LH: loop header
LB: loop body
LE: loop exit
PB: predicated region body
PF: predicated region fallthrough
CT: control target
= control target key end

     0   :  { %v665_v2 = vmov 0.0   ;;  %vm29_vm0 = vcmask 64512   ;;  %v666_v52 = vmov 0.0|0.0   ;;  %vm667_vm1 = vmmov 0   ;;  %s879_s0 = inlined_call_operand.vmem [shape: f32[8,256], index: 0, kind: input, shape index: {}]   ;;  %s880_s1 = inlined_call_operand.vmem [shape: f32[2,8], index: 1, kind: input, shape index: {}]   ;;  %s881_s3 = inlined_call_operand.vmem [shape: f32[256,32], index: 3, kind: input, shape index: {}]   ;;  %s882_s5 = inlined_call_operand.vmem [shape: f32[32,16], index: 5, kind: input, shape index: {}]   ;;  %s883_s6 = inlined_call_operand.vmem [shape: f32[16,32], index: 6, kind: input, shape index: {}]   ;;  %s884_s4 = inlined_call_operand.vmem [shape: f32[32,256], index: 4, kind: input, shape index: {}]   ;;  %s885_s2 = inlined_call_operand.vmem [shape: f32[8,2], index: 2, kind: input, shape index: {}]   ;;  %s886_s7 = inlined_call_operand.vmem [shape: f32[8,256], index: 7, kind: output, shape index: {}]  }
   0x1   :  { %v711_v0 = vld [vmem:[%s879_s0 + $0x8] sm:$0xff]  ;;  %v716_v1 = vld [vmem:[%s879_s0] sm:$0xff]  ;;  %97 = vmatprep.mubr.f32.mxu0 %v665_v2  ;;  %v122_v9 = vld [vmem:[%s881_s3 + $0x90] sm:$0xff]  ;;  %vm210_vm2 = vcmask 261120   ;;  %vm287_vm3 = vcmask 130048   ;;  %vm454_vm4 = vcmask 1041408  }
   0x2   :  { %v28_v3 = vld [vmem:[%s880_s1] sm:$0x3]  ;;  %33 = vmatprep.subr.mxu0 %v711_v0  ;;  %v121_v5 = vld [vmem:[%s881_s3 + $0x88] sm:$0xff]  ;;  %v123_v10 = vld [vmem:[%s881_s3 + $0x98] sm:$0xff]  ;;  %vm450_vm5 = vcmask 15360  }
   0x3   :  { %v120_v4 = vld [vmem:[%s881_s3 + $0x80] sm:$0xff]  ;;  %34 = vmatpush1.msra.mxu0 %v716_v1  ;;  %v105_v8 = vld [vmem:[%s881_s3 + $0x8] sm:$0xff]  ;;  %v613_v12 = vpack.c.bf16 %v123_v10, %v122_v9  ;;  %v106_v13 = vld [vmem:[%s881_s3 + $0x10] sm:$0xff] }
   0x4   :  { %v104_v6 = vld [vmem:[%s881_s3] sm:$0xff]  ;;  %v609_v7 = vpack.c.bf16 %v121_v5, %v120_v4  ;;  %540 = vmatmul.mubr.msk.f32.vlgmr.msra.gmra.mrb[0].mxu0 %vm29_vm0, %v28_v3  ;;  %v107_v14 = vld [vmem:[%s881_s3 + $0x18] sm:$0xff]  ;;  %v125_v16 = vld [vmem:[%s881_s3 + $0xa8] sm:$0xff]  ;;  %641 = vmatprep.subr.bf16.mxu0 %v666_v52 }
   0x5   :  { %v611_v11 = vpack.c.bf16 %v105_v8, %v104_v6  ;;  %v124_v15 = vld [vmem:[%s881_s3 + $0xa0] sm:$0xff]  ;;  %v615_v17 = vpack.c.bf16 %v107_v14, %v106_v13  ;;  %v109_v20 = vld [vmem:[%s881_s3 + $0x28] sm:$0xff]  ;;  %v126_v21 = vld [vmem:[%s881_s3 + $0xb0] sm:$0xff]  ;;  %599 = vmatprep.mubr.msk.f32.mxu0 %vm667_vm1, %v665_v2 }
   0x6   :  { %610 = vmatprep.subr.bf16.mxu1 %v609_v7  ;;  %v617_v18 = vpack.c.bf16 %v125_v16, %v124_v15  ;;  %v108_v19 = vld [vmem:[%s881_s3 + $0x20] sm:$0xff]  ;;  %v127_v22 = vld [vmem:[%s881_s3 + $0xb8] sm:$0xff]  ;;  %v110_v25 = vld [vmem:[%s881_s3 + $0x30] sm:$0xff] }
   0x7   :  { %612 = vmatpush3.bf16.msra.mxu1 %v611_v11  ;;  %v619_v23 = vpack.c.bf16 %v109_v20, %v108_v19  ;;  %v621_v24 = vpack.c.bf16 %v127_v22, %v126_v21  ;;  %v111_v26 = vld [vmem:[%s881_s3 + $0x38] sm:$0xff]  ;;  %v128_v27 = vld [vmem:[%s881_s3 + $0xc0] sm:$0xff]  ;;  %v129_v28 = vld [vmem:[%s881_s3 + $0xc8] sm:$0xff] }
   0x8   :  { %614 = vmatprep.subr.bf16.mxu1 %v613_v12  ;;  %v623_v29 = vpack.c.bf16 %v111_v26, %v110_v25  ;;  %v625_v30 = vpack.c.bf16 %v129_v28, %v128_v27  ;;  %v112_v31 = vld [vmem:[%s881_s3 + $0x40] sm:$0xff]  ;;  %v113_v32 = vld [vmem:[%s881_s3 + $0x48] sm:$0xff]  ;;  %v130_v33 = vld [vmem:[%s881_s3 + $0xd0] sm:$0xff] }
   0x9   :  { %v131_v34 = vld [vmem:[%s881_s3 + $0xd8] sm:$0xff]  ;;  %v627_v35 = vpack.c.bf16 %v113_v32, %v112_v31  ;;  %v114_v37 = vld [vmem:[%s881_s3 + $0x50] sm:$0xff]  ;;  %v132_v39 = vld [vmem:[%s881_s3 + $0xe0] sm:$0xff] }
   0xa   :  { %v629_v36 = vpack.c.bf16 %v131_v34, %v130_v33  ;;  %v115_v38 = vld [vmem:[%s881_s3 + $0x58] sm:$0xff]  ;;  %v133_v40 = vld [vmem:[%s881_s3 + $0xe8] sm:$0xff]  ;;  %v116_v43 = vld [vmem:[%s881_s3 + $0x60] sm:$0xff] }
   0xb   :  { %616 = vmatpush3.bf16.msra.mxu1 %v615_v17  ;;  %v631_v41 = vpack.c.bf16 %v115_v38, %v114_v37  ;;  %v633_v42 = vpack.c.bf16 %v133_v40, %v132_v39  ;;  %v117_v44 = vld [vmem:[%s881_s3 + $0x68] sm:$0xff]  ;;  %v134_v45 = vld [vmem:[%s881_s3 + $0xf0] sm:$0xff]  ;;  %v135_v46 = vld [vmem:[%s881_s3 + $0xf8] sm:$0xff] }
   0xc   :  { %618 = vmatprep.subr.bf16.mxu1 %v617_v18  ;;  %v635_v47 = vpack.c.bf16 %v117_v44, %v116_v43  ;;  %v637_v48 = vpack.c.bf16 %v135_v46, %v134_v45  ;;  %v118_v49 = vld [vmem:[%s881_s3 + $0x70] sm:$0xff]  ;;  %v119_v50 = vld [vmem:[%s881_s3 + $0x78] sm:$0xff]  ;;  %v206_v53 = vld [vmem:[%s882_s5] sm:$0xff] }
   0xd   :  { %v639_v51 = vpack.c.bf16 %v119_v50, %v118_v49  ;;  %v207_v54 = vld [vmem:[%s882_s5 + $0x8] sm:$0xff]  ;;  %v208_v58 = vld [vmem:[%s882_s5 + $0x10] sm:$0xff]  ;;  %v209_v59 = vld [vmem:[%s882_s5 + $0x18] sm:$0xff] }
   0xe   :  { %v642_v55 = vpack.c.bf16 %v207_v54, %v206_v53  ;;  %v645_v60 = vpack.c.bf16 %v209_v59, %v208_v58  ;;  %v285_v3 = vld [vmem:[%s883_s6] sm:$0xff]  ;;  %v286_v4 = vld [vmem:[%s883_s6 + $0x8] sm:$0xff]  ;;  %v370_v10 = vld [vmem:[%s884_s4 + $0x18] sm:$0xff] }
   0xf   :  { %620 = vmatpush3.bf16.msra.mxu1 %v619_v23  ;;  %v648_v5 = vpack.c.bf16 %v286_v4, %v285_v3  ;;  %v368_v9 = vld [vmem:[%s884_s4 + $0x8] sm:$0xff]  ;;  %v367_v11 = vld [vmem:[%s884_s4] sm:$0xff]  ;;  %v369_v13 = vld [vmem:[%s884_s4 + $0x10] sm:$0xff] }
  0x10   :  { %622 = vmatprep.subr.bf16.mxu1 %v621_v24  ;;  %643 = vmatpush3.bf16.msra.mxu0 %v642_v55  ;;  %v650_v12 = vpack.c.bf16 %v370_v10, %v368_v9  ;;  %v372_v14 = vld [vmem:[%s884_s4 + $0x28] sm:$0xff]  ;;  %v374_v15 = vld [vmem:[%s884_s4 + $0x38] sm:$0xff]  ;;  %v652_v16 = vpack.c.bf16 %v369_v13, %v367_v11  ;;  %v371_v18 = vld [vmem:[%s884_s4 + $0x20] sm:$0xff] }
  0x11   :  { %644 = vmatprep.subr.bf16.mxu0 %v666_v52  ;;  %v654_v17 = vpack.c.bf16 %v374_v15, %v372_v14  ;;  %v373_v19 = vld [vmem:[%s884_s4 + $0x30] sm:$0xff] }
  0x12   :  { %v656_v20 = vpack.c.bf16 %v373_v19, %v371_v18 }
  0x13   :  { %624 = vmatpush3.bf16.msra.mxu1 %v623_v29  ;;  %v449_v29 = vld [vmem:[%s885_s2] sm:$0xff] }
  0x14   :  { %626 = vmatprep.subr.bf16.mxu1 %v625_v30  ;;  %646 = vmatpush3.bf16.msra.mxu0 %v645_v60 }
  0x15   :  { %647 = vmatprep.subr.bf16.mxu0 %v666_v52 }
  0x17   :  { %628 = vmatpush3.bf16.msra.mxu1 %v627_v35 }
  0x18   :  { %630 = vmatprep.subr.bf16.mxu1 %v629_v36 }
  0x1b   :  { %632 = vmatpush3.bf16.msra.mxu1 %v631_v41 }
  0x1c   :  { %634 = vmatprep.subr.bf16.mxu1 %v633_v42 }
  0x1f   :  { %636 = vmatpush3.bf16.msra.mxu1 %v635_v47 }
  0x20   :  { %638 = vmatprep.subr.bf16.mxu1 %v637_v48 }
  0x23   :  { %640 = vmatpush3.bf16.msra.mxu1 %v639_v51 }
  0xd7   :  { %v99_v56 = vpop.f32.mrb[0].mxu0 }
  0xd8   :  { %v101_v57 = vpop.f32.mrb[1].mxu0 }
  0xd9   :  { %200 = vmatprep.mubr.f32.mxu1 %v101_v57 }
  0xda   :  { %201 = vmatmul.mubr.f32.vlgmr.msra.gmra.mrb[0].mxu1 %v99_v56 }
 0x1ad   :  { %v580_v61 = vpop.f32.mrb[0].mxu1 }
 0x1ae   :  { %v581_v62 = vpop.f32.mrb[1].mxu1 }
 0x1af   :  { %v582_v63 = vadd.f32 %v581_v62, %v580_v61 }
 0x1b1   :  { %600 = vmatmul.mubr.msk.f32.vlgmr.msra.gmra.mrb[2].mxu0 %vm210_vm2, %v582_v63 }
 0x1b2   :  { %606 = vmatprep.mubr.msk.f32.mxu0 %vm667_vm1, %v665_v2  ;;  %649 = vmatpush3.bf16.msra.mxu0 %v648_v5 }
 0x1b3   :  { %651 = vmatprep.subr.bf16.mxu0 %v650_v12 }
 0x284   :  { %v280_v6 = vpop.f32.mrb[2].mxu0 }
 0x285   :  { %v284_v7 = vmax.f32 %v280_v6, 0.0  ;;  %v601_v8 = vpop.f32.mrb[3].mxu0 }
 0x287   :  { %607 = vmatmul.mubr.msk.f32.vlgmr.msra.gmra.mrb[4].mxu0 %vm287_vm3, %v284_v7 }
 0x288   :  { %442 = vmatprep.mubr.f32.mxu0 %v665_v2  ;;  %653 = vmatpush1.bf16.msra.mxu0 %v652_v16 }
 0x289   :  { %655 = vmatprep.subr.bf16.mxu0 %v654_v17 }
 0x28c   :  { %657 = vmatpush1.bf16.msra.mxu0 %v656_v20 }
 0x35a   :  { %v357_v21 = vpop.f32.mrb[4].mxu0 }
 0x35b   :  { %v543_v22 = vmul.f32 -1.442695, %v357_v21  ;;  %v608_v23 = vpop.f32.mrb[5].mxu0 }
 0x35d   :  { %661 = vpow2.f32 %v543_v22 }
 0x367   :  { %v662_v24 = vpop.eup %661 }
 0x368   :  { %v364_v25 = vadd.f32 1.0, %v662_v24 }
 0x36a   :  { %663 = vrcp.f32 %v364_v25 }
 0x374   :  { %v664_v26 = vpop.eup %663 }
 0x375   :  { %544 = vmatmul.mubr.msk.f32.vlgmr.msra.gmra.mrb[6].mxu0 %vm210_vm2, %v664_v26 }
 0x376   :  { %525 = vmatprep.mubr.f32.mxu0 %v665_v2 }
 0x448   :  { %v444_v27 = vpop.f32.mrb[6].mxu0 }
 0x449   :  { %v446_v28 = vpop.f32.mrb[7].mxu0 }
 0x44a   :  { %545 = vmatprep.subr.msk.mxu0 %vm454_vm4, %v446_v28 }
 0x44b   :  { %546 = vmatpush1.msk.msra.mxu0 %vm454_vm4, %v444_v27 }
 0x44c   :  { %547 = vmatmul.mubr.msk.f32.vlgmr.msra.gmra.mrb[8].mxu0 %vm450_vm5, %v449_v29 }
 0x51f   :  { %v527_v30 = vpop.f32.mrb[8].mxu0 }
 0x520   :  { %v532_v31 = vmul.f32 %v527_v30, %v716_v1  ;;  %v529_v32 = vpop.f32.mrb[9].mxu0 }
 0x521   :  { %v533_v33 = vmul.f32 %v529_v32, %v711_v0 }
 0x522   :  { %534 = vst [vmem:[%s886_s7] sm:$0xff] %v532_v31 }
 0x523   :  { %535 = vst [vmem:[%s886_s7 + $0x8] sm:$0xff] %v533_v33 }

</bundles_post_ra>
